<compile_context>
chip_gen: v5e
topology: v5e:2x2
jax: 0.10.0
libtpu: 0.0.40
codegen_flags: <defaults>
</compile_context>

<pallas_src>
import functools

import jax
import jax.numpy as jnp
from jax.experimental import pallas as pl
from jax.experimental.pallas import tpu as pltpu

LANE = 128


def _round_up(x, m):
    return (x + m - 1) // m * m


def _conv_leaky_kernel(x_ref, w_ref, o_ref, *, kh_taps, neg_slope):
    """Fused Conv2d(stride=1, bias=False) + LeakyReLU for one full sample.

    x_ref: (Hp, Lin_pad)            one H-padded image, W*Cin lane-flat (+zero lanes)
    w_ref: (KH, Lin_pad, Lout_pad)  Toeplitz-expanded conv weights (W padding folded in)
    o_ref: (Ho, Lout_pad)           full output of the sample, lane-dense
    """
    ho = o_ref.shape[0]
    acc = jnp.zeros(o_ref.shape, jnp.float32)
    for kh in range(kh_taps):                       # static, unrolled (KH = 3)
        rows = x_ref[pl.ds(kh, ho), :]              # (Ho, Lin_pad)
        acc += jnp.dot(rows.astype(w_ref.dtype), w_ref[kh],
                       preferred_element_type=jnp.float32)
    # LeakyReLU without a select: max(y, slope*y) == LeakyReLU(y) for 0 < slope < 1.
    y = jnp.maximum(acc, neg_slope * acc)
    o_ref[...] = y.astype(o_ref.dtype)


def _lowered_conv_weights(weight_oihw, W, Wo, padding, lin_pad, lout_pad, dtype):
    """(Cout, Cin, KH, KW) -> (KH, Lin_pad, Lout_pad) Toeplitz matmul weights.

    W-direction zero padding of the conv is folded into the shift matrices
    (k = padding - kw), so the runtime input only needs the 2 H halo rows.
    """
    Cout, Cin, KH, KW = weight_oihw.shape
    w = jnp.transpose(weight_oihw, (2, 3, 1, 0)).astype(jnp.float32)  # (KH,KW,Cin,Cout)
    taps = []
    for kh in range(KH):
        t = jnp.zeros((W * Cin, Wo * Cout), jnp.float32)
        for kw in range(KW):
            # out[w_out] += x[w_out + kw - padding] * w[kh, kw]  (OOB terms are zero)
            shift = jnp.eye(W, Wo, k=padding - kw, dtype=jnp.float32)
            t = t + jnp.kron(shift, w[kh, kw])
        taps.append(t)
    w_low = jnp.stack(taps, axis=0)                                    # (KH, W*Cin, Wo*Cout)
    w_low = jnp.pad(w_low, ((0, 0),
                            (0, lin_pad - W * Cin),
                            (0, lout_pad - Wo * Cout)))
    return w_low.astype(dtype)


def make_simple_conv_layer(weight, image_hw, *, stride=1, padding=1,
                           neg_slope=0.01, compute_dtype=jnp.float32):
    """Builds the SimpleConvLayer forward; weight lowering happens ONCE here.

    weight:   (Cout, Cin, KH, KW)   conv weights (bias-free BasicConv2d)
    image_hw: (H, W)                spatial size of the inputs this layer will see
    Returns forward(seqs, views) -> (N, Cout, Ho, Wo), matching the torch module.
    """
    assert stride == 1  # TODO(synk): strided-conv path not implemented
    Cout, Cin, KH, KW = weight.shape
    H, W = image_hw
    Hp = H + 2 * padding
    Ho = Hp - KH + 1
    Wo = W + 2 * padding - KW + 1

    lin, lout = W * Cin, Wo * Cout
    lin_pad = _round_up(lin, LANE)     # unmasked vld on the LHS rows
    lout_pad = _round_up(lout, LANE)   # unmasked lane-dense vst on the output

    # Precomputed once per weight (parameter-load time), never inside forward.
    w_low = _lowered_conv_weights(weight, W, Wo, padding, lin_pad, lout_pad,
                                  compute_dtype)

    kernel = functools.partial(_conv_leaky_kernel, kh_taps=KH, neg_slope=neg_slope)

    @jax.jit
    def forward(seqs, views=None):
        del views  # unused by the original forward as well
        N, cin, h, w_ = seqs.shape
        assert (cin, h, w_) == (Cin, H, W), (cin, h, w_)

        # NCHW -> (N, H, W*Cin) lane-flat (one transpose; the reshape is free),
        # then a single pad for the 2 H halo rows + zero lanes up to 128.
        x = jnp.transpose(seqs, (0, 2, 3, 1)).reshape(N, H, lin)
        x = jnp.pad(x, ((0, 0), (padding, padding), (0, lin_pad - lin)))

        # v7x dual-TC sharding only pays off with enough per-core steps.
        dim_sem = ("parallel",) if N >= 8 else ("arbitrary",)

        out_flat = pl.pallas_call(
            kernel,
            out_shape=jax.ShapeDtypeStruct((N, Ho, lout_pad), seqs.dtype),
            grid=(N,),
            in_specs=[
                # one full H-padded image per grid step
                pl.BlockSpec((None, Hp, lin_pad), lambda n: (n, 0, 0)),
                # lowered weights, grid-invariant (fetched once, revisited)
                pl.BlockSpec((KH, lin_pad, lout_pad), lambda n: (0, 0, 0)),
            ],
            out_specs=pl.BlockSpec((None, Ho, lout_pad), lambda n: (n, 0, 0)),
            compiler_params=pltpu.CompilerParams(
                dimension_semantics=dim_sem,
                # let XLA fuse the transpose/pad relayout into the kernel input
                allow_input_fusion=[True, False],
            ),
        )(x, w_low)

        if lout_pad != lout:                      # strip output lane padding
            out_flat = out_flat[..., :lout]
        out = out_flat.reshape(N, Ho, Wo, Cout)
        return jnp.transpose(out, (0, 3, 1, 2))   # back to NCHW

    return forward


def _reference(seqs, weight, *, padding=1, neg_slope=0.01):
    """Plain-JAX reference: Conv2d(bias=False) -> LeakyReLU."""
    y = jax.lax.conv_general_dilated(
        seqs, weight, window_strides=(1, 1),
        padding=[(padding, padding), (padding, padding)],
        dimension_numbers=("NCHW", "OIHW", "NCHW"))
    return jnp.where(y >= 0, y, neg_slope * y)


if __name__ == "__main__":
    # SimpleConvLayer(cfg="conv-8", in_channel=4, kernel_size=3, stride=1, padding=1)
    N, Cin, H, W = 2, 4, 16, 16
    Cout, KH, KW = 8, 3, 3

    key = jax.random.PRNGKey(0)
    kx, kw = jax.random.split(key, 2)
    seqs = jax.random.normal(kx, (N, Cin, H, W), jnp.float32)
    views = jnp.zeros((N,), jnp.int32)   # present in forward(), unused
    weight = 0.1 * jax.random.normal(kw, (Cout, Cin, KH, KW), jnp.float32)

    ref = _reference(seqs, weight, padding=1)

    # f32 MXU operands: bit-tight check against the reference.
    fwd = make_simple_conv_layer(weight, (H, W), stride=1, padding=1,
                                 neg_slope=0.01, compute_dtype=jnp.float32)
    out = jax.block_until_ready(fwd(seqs, views))
    assert out.shape == (N, Cout, H, W), out.shape
    assert jnp.allclose(out, ref, atol=1e-4, rtol=1e-4), \
        float(jnp.max(jnp.abs(out - ref)))

    # bf16 MXU operands (v6e/v7x native path), f32 accumulation: looser tolerance.
    fwd_bf16 = make_simple_conv_layer(weight, (H, W), stride=1, padding=1,
                                      neg_slope=0.01, compute_dtype=jnp.bfloat16)
    out_b = jax.block_until_ready(fwd_bf16(seqs, views))
    assert jnp.allclose(out_b, ref, atol=2e-2, rtol=2e-2), \
        float(jnp.max(jnp.abs(out_b - ref)))

    print("KERNEL_OK")
</pallas_src>

<mosaic_0001>
module attributes {stable_mosaic.version = 11 : i64} {
  func.func @_conv_leaky_kernel(%arg0: i32, %arg1: memref<1x18x128xf32, #tpu.memory_space<vmem>>, %arg2: memref<3x128x128xf32, #tpu.memory_space<vmem>>, %arg3: memref<1x16x128xf32, #tpu.memory_space<vmem>>) attributes {dimension_semantics = [#tpu.dimension_semantics<arbitrary>], iteration_bounds = array<i64: 2>, scalar_prefetch = 0 : i64, scratch_operands = 0 : i64, tpu.core_type = #tpu.core_type<tc>, window_params = [{transform_indices = @transform_0, window_bounds = array<i64: 1, 18, 128>}, {pipeline_mode = #tpu.pipeline_mode<synchronous>, transform_indices = @transform_1, window_bounds = array<i64: 3, 128, 128>}, {transform_indices = @transform_2, window_bounds = array<i64: 1, 16, 128>}]} {
    %cst = arith.constant 0.000000e+00 : f32
    %0 = vector.broadcast %cst : f32 to vector<16x128xf32>
    %c0 = arith.constant 0 : index
    %c0_0 = arith.constant 0 : index
    %c0_1 = arith.constant 0 : index
    %1 = vector.load %arg1[%c0, %c0_0, %c0_1] : memref<1x18x128xf32, #tpu.memory_space<vmem>>, vector<1x16x128xf32>
    %2 = vector.shape_cast %1 : vector<1x16x128xf32> to vector<16x128xf32>
    %c0_2 = arith.constant 0 : index
    %c0_3 = arith.constant 0 : index
    %c0_4 = arith.constant 0 : index
    %3 = vector.load %arg2[%c0_2, %c0_3, %c0_4] : memref<3x128x128xf32, #tpu.memory_space<vmem>>, vector<1x128x128xf32>
    %4 = vector.shape_cast %3 : vector<1x128x128xf32> to vector<128x128xf32>
    %cst_5 = arith.constant dense<0.000000e+00> : vector<16x128xf32>
    %5 = tpu.matmul %2, %4, %cst_5 {dimension_numbers = #tpu.dot_dimension_numbers<[1], [0], [0], [1], [0, 0, 1, 1], [], []>} : vector<16x128xf32>, vector<128x128xf32>, vector<16x128xf32> -> vector<16x128xf32>
    %6 = arith.addf %0, %5 : vector<16x128xf32>
    %c0_6 = arith.constant 0 : index
    %c1 = arith.constant 1 : index
    %c0_7 = arith.constant 0 : index
    %7 = vector.load %arg1[%c0_6, %c1, %c0_7] : memref<1x18x128xf32, #tpu.memory_space<vmem>>, vector<1x16x128xf32>
    %8 = vector.shape_cast %7 : vector<1x16x128xf32> to vector<16x128xf32>
    %c1_8 = arith.constant 1 : index
    %c0_9 = arith.constant 0 : index
    %c0_10 = arith.constant 0 : index
    %9 = vector.load %arg2[%c1_8, %c0_9, %c0_10] : memref<3x128x128xf32, #tpu.memory_space<vmem>>, vector<1x128x128xf32>
    %10 = vector.shape_cast %9 : vector<1x128x128xf32> to vector<128x128xf32>
    %cst_11 = arith.constant dense<0.000000e+00> : vector<16x128xf32>
    %11 = tpu.matmul %8, %10, %cst_11 {dimension_numbers = #tpu.dot_dimension_numbers<[1], [0], [0], [1], [0, 0, 1, 1], [], []>} : vector<16x128xf32>, vector<128x128xf32>, vector<16x128xf32> -> vector<16x128xf32>
    %12 = arith.addf %6, %11 : vector<16x128xf32>
    %c0_12 = arith.constant 0 : index
    %c2 = arith.constant 2 : index
    %c0_13 = arith.constant 0 : index
    %13 = vector.load %arg1[%c0_12, %c2, %c0_13] : memref<1x18x128xf32, #tpu.memory_space<vmem>>, vector<1x16x128xf32>
    %14 = vector.shape_cast %13 : vector<1x16x128xf32> to vector<16x128xf32>
    %c2_14 = arith.constant 2 : index
    %c0_15 = arith.constant 0 : index
    %c0_16 = arith.constant 0 : index
    %15 = vector.load %arg2[%c2_14, %c0_15, %c0_16] : memref<3x128x128xf32, #tpu.memory_space<vmem>>, vector<1x128x128xf32>
    %16 = vector.shape_cast %15 : vector<1x128x128xf32> to vector<128x128xf32>
    %cst_17 = arith.constant dense<0.000000e+00> : vector<16x128xf32>
    %17 = tpu.matmul %14, %16, %cst_17 {dimension_numbers = #tpu.dot_dimension_numbers<[1], [0], [0], [1], [0, 0, 1, 1], [], []>} : vector<16x128xf32>, vector<128x128xf32>, vector<16x128xf32> -> vector<16x128xf32>
    %18 = arith.addf %12, %17 : vector<16x128xf32>
    %cst_18 = arith.constant 0.00999999977 : f32
    %19 = vector.broadcast %cst_18 : f32 to vector<16x128xf32>
    %20 = arith.mulf %19, %18 : vector<16x128xf32>
    %21 = arith.maximumf %18, %20 : vector<16x128xf32>
    %c0_19 = arith.constant 0 : index
    %c0_20 = arith.constant 0 : index
    %c0_21 = arith.constant 0 : index
    %22 = vector.load %arg3[%c0_19, %c0_20, %c0_21] : memref<1x16x128xf32, #tpu.memory_space<vmem>>, vector<1x16x128xf32>
    %23 = vector.shape_cast %22 : vector<1x16x128xf32> to vector<16x128xf32>
    %24 = vector.shape_cast %21 : vector<16x128xf32> to vector<1x16x128xf32>
    tpu.vector_store %arg3[%c0_19, %c0_20, %c0_21], %24 {strides = array<i32>} : memref<1x16x128xf32, #tpu.memory_space<vmem>>, vector<1x16x128xf32>,
    return
  }
  func.func @transform_0(%arg0: i32) -> (i32, i32, i32) {
    %c0_i32 = arith.constant 0 : i32
    %c0_i32_0 = arith.constant 0 : i32
    %c0_i32_1 = arith.constant 0 : i32
    return %arg0, %c0_i32, %c0_i32_0 : i32, i32, i32
  }
  func.func @transform_1(%arg0: i32) -> (i32, i32, i32) {
    %c0_i32 = arith.constant 0 : i32
    %c0_i32_0 = arith.constant 0 : i32
    %c0_i32_1 = arith.constant 0 : i32
    %c0_i32_2 = arith.constant 0 : i32
    return %c0_i32, %c0_i32_0, %c0_i32_1 : i32, i32, i32
  }
  func.func @transform_2(%arg0: i32) -> (i32, i32, i32) {
    %c0_i32 = arith.constant 0 : i32
    %c0_i32_0 = arith.constant 0 : i32
    %c0_i32_1 = arith.constant 0 : i32
    return %arg0, %c0_i32, %c0_i32_0 : i32, i32, i32
  }
}

</mosaic_0001>

<bundles_post_ra>
// kernel: forward.2
= control target key start
LH: loop header
LB: loop body
LE: loop exit
PB: predicated region body
PF: predicated region fallthrough
CT: control target
= control target key end

     0   :  { %s483_s14 = smov 0   ;;  %s672_s0 = inlined_call_operand.vmem [shape: f32[3,128,128], index: 0, kind: input, shape index: {}]   ;;  %s673_s1 = inlined_call_operand.vmem [shape: f32[2,16,64], index: 1, kind: input, shape index: {}]   ;;  %s674_s2 = inlined_call_operand.<no memory space> [shape: f32[], index: 2, kind: input, shape index: {}]   ;;  %s675_s3 = inlined_call_operand.vmem [shape: f32[2,16,128], index: 3, kind: output, shape index: {}]  }
   0x1   :  { %v481_v0 = vstv %s674_s2 }
   0x2 LB: > { %s378_s15 = sadd.s32 4294967295, %s456_s14   ;;  %p382_p0 = scmp.ge.s32.totalorder %s456_s14, 1  ;;  %s456_s14 = sphi %s483_s14, %s14_s14  }
   0x3   : > { %p115_p1 = scmp.lt.s32.totalorder %s456_s14, 3 }
   0x5   : > { %p116_p2 = pnand %p382_p0, %p115_p1 }
   0x7   : > { %119 = sbr.rel (%p116_p2) target bundleno = 191 (0xbf), region = 28 }
   0xc   : > { %v421_v1 = vld [vmem:[%s672_s0 + $0x178] sm:$0xff]  ;;  %v420_v2 = vld [vmem:[%s672_s0 + $0x170] sm:$0xff]  ;;  %p500_p3 = scmp.lt.s32.totalorder %s378_s15, 1  ;;  %v419_v6 = vld [vmem:[%s672_s0 + $0x168] sm:$0xff]  ;;  %v151_v12 = vlaneseq  ;;  %vm156_vm1 = vcmask 1046528  }
   0xd   : > { %v405_v3 = vld [vmem:[%s672_s0 + $0xf8] sm:$0xff]  ;;  %285 = vmatpush.msra.mxu2 %v421_v1  ;;  %v404_v5 = vld [vmem:[%s672_s0 + $0xf0] sm:$0xff]  ;;  %v403_v8 = vld [vmem:[%s672_s0 + $0xe8] sm:$0xff] }
   0xe   : > { %220 = vmatpush.msra.mxu0 %v405_v3  ;;  %v200_v4 = vld [vmem:[%s672_s0 + $0x78] sm:$0xff]  ;;  %426 = vmatpush.msra.mxu3 %v405_v3  ;;  %v199_v7 = vld [vmem:[%s672_s0 + $0x70] sm:$0xff]  ;;  %v198_v9 = vld [vmem:[%s672_s0 + $0x68] sm:$0xff]  ;;  %s678_s15 = smov (!%p500_p3, %s378_s15), 1  ;;  %v152_v19 = vand.u32 127, %v151_v12 }
   0xf   : > { %243 = vmatpush.msra.mxu1 %v200_v4  ;;  %286 = vmatpush.msra.mxu2 %v420_v2  ;;  %v418_v10 = vld [vmem:[%s672_s0 + $0x160] sm:$0xff]  ;;  %v417_v14 = vld [vmem:[%s672_s0 + $0x158] sm:$0xff]  ;;  %v416_v17 = vld [vmem:[%s672_s0 + $0x150] sm:$0xff]  ;;  %s424_s24 = sshll.u32 %s678_s15, 4 }
  0x10   : > { %221 = vmatpush.msra.mxu0 %v404_v5  ;;  %427 = vmatpush.msra.mxu3 %v404_v5  ;;  %v402_v11 = vld [vmem:[%s672_s0 + $0xe0] sm:$0xff]  ;;  %v401_v15 = vld [vmem:[%s672_s0 + $0xd8] sm:$0xff]  ;;  %v400_v18 = vld [vmem:[%s672_s0 + $0xd0] sm:$0xff]  ;;  %s349_s8 = scalar_lea.vmem %s673_s1, %s424_s24  ;;  %vm154_vm0 = vcmp.lt.s32.totalorder %v152_v19, 64  ;;  %s148_s17 = scalar_lea.vmem %s675_s3, %s424_s24 }
  0x11   : > { %244 = vmatpush.msra.mxu1 %v199_v7  ;;  %287 = vmatpush.msra.mxu2 %v419_v6  ;;  %v197_v13 = vld [vmem:[%s672_s0 + $0x60] sm:$0xff]  ;;  %v196_v16 = vld [vmem:[%s672_s0 + $0x58] sm:$0xff]  ;;  %v195_v20 = vld [vmem:[%s672_s0 + $0x50] sm:$0xff] }
  0x12   : > { %222 = vmatpush.msra.mxu0 %v403_v8  ;;  %428 = vmatpush.msra.mxu3 %v403_v8  ;;  %v415_v21 = vld [vmem:[%s672_s0 + $0x148] sm:$0xff]  ;;  %v414_v24 = vld [vmem:[%s672_s0 + $0x140] sm:$0xff]  ;;  %v413_v27 = vld [vmem:[%s672_s0 + $0x138] sm:$0xff] }
  0x13   : > { %245 = vmatpush.msra.mxu1 %v198_v9  ;;  %288 = vmatpush.msra.mxu2 %v418_v10  ;;  %v399_v22 = vld [vmem:[%s672_s0 + $0xc8] sm:$0xff]  ;;  %v398_v25 = vld [vmem:[%s672_s0 + $0xc0] sm:$0xff]  ;;  %v397_v28 = vld [vmem:[%s672_s0 + $0xb8] sm:$0xff] }
  0x14   : > { %223 = vmatpush.msra.mxu0 %v402_v11  ;;  %429 = vmatpush.msra.mxu3 %v402_v11  ;;  %v194_v23 = vld [vmem:[%s672_s0 + $0x48] sm:$0xff]  ;;  %v193_v26 = vld [vmem:[%s672_s0 + $0x40] sm:$0xff]  ;;  %v192_v30 = vld [vmem:[%s672_s0 + $0x38] sm:$0xff] }
  0x15   : > { %246 = vmatpush.msra.mxu1 %v197_v13  ;;  %289 = vmatpush.msra.mxu2 %v417_v14  ;;  %v388_v29 = vld [vmem:[%s349_s8] sm:$0xff]  ;;  %v389_v32 = vld [vmem:[%s349_s8 + $0x8] sm:$0xff]  ;;  %v412_v33 = vld [vmem:[%s672_s0 + $0x130] sm:$0xff] }
  0x16   : > { %224 = vmatpush.msra.mxu0 %v401_v15  ;;  %430 = vmatpush.msra.mxu3 %v401_v15  ;;  %v155_v31 = vsel %vm154_vm0, %v388_v29, %v481_v0  ;;  %v396_v34 = vld [vmem:[%s672_s0 + $0xb0] sm:$0xff]  ;;  %v168_v36 = vsel %vm154_vm0, %v389_v32, %v481_v0  ;;  %v411_v41 = vld [vmem:[%s672_s0 + $0x128] sm:$0xff]  ;;  %v410_v46 = vld [vmem:[%s672_s0 + $0x120] sm:$0xff] }
  0x17   : > { %247 = vmatpush.msra.mxu1 %v196_v16  ;;  %290 = vmatpush.msra.mxu2 %v416_v17  ;;  %v596_v35 = vsel %vm156_vm1, %v155_v31, %v481_v0  ;;  %v191_v37 = vld [vmem:[%s672_s0 + $0x30] sm:$0xff]  ;;  %v605_v39 = vsel %vm156_vm1, %v168_v36, %v155_v31  ;;  %v177_v40 = vsel %vm156_vm1, %v481_v0, %v168_v36  ;;  %v395_v42 = vld [vmem:[%s672_s0 + $0xa8] sm:$0xff]  ;;  %v394_v47 = vld [vmem:[%s672_s0 + $0xa0] sm:$0xff] }
  0x18   : > { %225 = vmatpush.msra.mxu0 %v400_v18  ;;  %431 = vmatpush.msra.mxu3 %v400_v18  ;;  %v158_v38 = vrot.slane %v596_v35, 7  ;;  %v171_v43 = vrot.slane %v605_v39, 7  ;;  %v178_v44 = vrot.slane %v177_v40, 7  ;;  %v190_v45 = vld [vmem:[%s672_s0 + $0x28] sm:$0xff]  ;;  %v189_v48 = vld [vmem:[%s672_s0 + $0x20] sm:$0xff]  ;;  %v409_v49 = vld [vmem:[%s672_s0 + $0x118] sm:$0xff] }
  0x19   : > { %248 = vmatpush.msra.mxu1 %v195_v20  ;;  %291 = vmatpush.msra.mxu2 %v415_v21  ;;  %v393_v50 = vld [vmem:[%s672_s0 + $0x98] sm:$0xff]  ;;  %v408_v52 = vld [vmem:[%s672_s0 + $0x110] sm:$0xff]  ;;  %v407_v55 = vld [vmem:[%s672_s0 + $0x108] sm:$0xff] }
  0x1a   : > { %226 = vmatpush.msra.mxu0 %v399_v22  ;;  %432 = vmatpush.msra.mxu3 %v399_v22  ;;  %161 = vst [vmem:[#allocation7] sm:$0xff] %v158_v38  ;;  %v188_v51 = vld [vmem:[%s672_s0 + $0x18] sm:$0xff]  ;;  %v392_v53 = vld [vmem:[%s672_s0 + $0x90] sm:$0xff]  ;;  %v391_v56 = vld [vmem:[%s672_s0 + $0x88] sm:$0xff] }
  0x1b   : > { %249 = vmatpush.msra.mxu1 %v194_v23  ;;  %292 = vmatpush.msra.mxu2 %v414_v24  ;;  %175 = vst [vmem:[#allocation7 + $0x8] sm:$0xff] %v171_v43  ;;  %v187_v54 = vld [vmem:[%s672_s0 + $0x10] sm:$0xff]  ;;  %v186_v57 = vld [vmem:[%s672_s0 + $0x8] sm:$0xff]  ;;  %v406_v58 = vld [vmem:[%s672_s0 + $0x100] sm:$0xff] }
  0x1c   : > { %227 = vmatpush.msra.mxu0 %v398_v25  ;;  %433 = vmatpush.msra.mxu3 %v398_v25  ;;  %182 = vst [vmem:[#allocation7 + $0x10] sm:$0xff] %v178_v44  ;;  %v390_v59 = vld [vmem:[%s672_s0 + $0x80] sm:$0xff] }
  0x1d   : > { %250 = vmatpush.msra.mxu1 %v193_v26  ;;  %293 = vmatpush.msra.mxu2 %v413_v27  ;;  %v185_v61 = vld [vmem:[%s672_s0] sm:$0xff] }
  0x1e   : > { %228 = vmatpush.msra.mxu0 %v397_v28  ;;  %434 = vmatpush.msra.mxu3 %v397_v28 }
  0x1f   : > { %251 = vmatpush.msra.mxu1 %v192_v30  ;;  %294 = vmatpush.msra.mxu2 %v412_v33 }
  0x20   : > { %229 = vmatpush.msra.mxu0 %v396_v34  ;;  %435 = vmatpush.msra.mxu3 %v396_v34 }
  0x21   : > { %252 = vmatpush.msra.mxu1 %v191_v37  ;;  %295 = vmatpush.msra.mxu2 %v411_v41 }
  0x22   : > { %230 = vmatpush.msra.mxu0 %v395_v42  ;;  %436 = vmatpush.msra.mxu3 %v395_v42  ;;  %v266_v60 = vld [vmem:[#allocation7 + $0x2] sm:$0xff] }
  0x23   : > { %253 = vmatpush.msra.mxu1 %v190_v45  ;;  %296 = vmatpush.msra.mxu2 %v410_v46  ;;  %v201_v62 = vld [vmem:[#allocation7 + $0x1] sm:$0xff]  ;;  %v202_v63 = vld [vmem:[#allocation7 + $0x9] sm:$0xff] }
  0x24   : > { %231 = vmatpush.msra.mxu0 %v394_v47  ;;  %437 = vmatpush.msra.mxu3 %v394_v47  ;;  %v267_v1 = vld [vmem:[#allocation7 + $0xa] sm:$0xff] }
  0x25   : > { %254 = vmatpush.msra.mxu1 %v189_v48  ;;  %297 = vmatpush.msra.mxu2 %v409_v49 }
  0x26   : > { %232 = vmatpush.msra.mxu0 %v393_v50  ;;  %438 = vmatpush.msra.mxu3 %v393_v50 }
  0x27   : > { %255 = vmatpush.msra.mxu1 %v188_v51  ;;  %298 = vmatpush.msra.mxu2 %v408_v52 }
  0x28   : > { %233 = vmatpush.msra.mxu0 %v392_v53  ;;  %439 = vmatpush.msra.mxu3 %v392_v53 }
  0x29   : > { %256 = vmatpush.msra.mxu1 %v187_v54  ;;  %299 = vmatpush.msra.mxu2 %v407_v55 }
  0x2a   : > { %234 = vmatpush.msra.mxu0 %v391_v56  ;;  %440 = vmatpush.msra.mxu3 %v391_v56 }
  0x2b   : > { %257 = vmatpush.msra.mxu1 %v186_v57  ;;  %300 = vmatpush.msra.mxu2 %v406_v58 }
  0x2c   : > { %235 = vmatpush.msra.mxu0 %v390_v59  ;;  %301 = vmatmul.f32.vlgmr.msra.gmra.mxu2 %v266_v60 }
  0x2d   : > { %258 = vmatpush.msra.mxu1 %v185_v61  ;;  %236 = vmatmul.f32.vlgmr.msra.gmra.mxu0 %v201_v62 }
  0x2e   : > { %259 = vmatmul.f32.vlgmr.msra.gmra.mxu1 %v158_v38  ;;  %441 = vmatpush.msra.mxu3 %v390_v59 }
  0x2f   : > { %239 = vmatmul.f32.vlgmr.msra.gmra.mxu3 %v202_v63 }
  0x34   : > { %304 = vmatmul.f32.gmra.mxu2 %v267_v1 }
  0x36   : > { %262 = vmatmul.f32.gmra.mxu1 %v171_v43 }
  0xaa   : > { %v237_v2 = vpop.f32.mrf.mxu0 }
  0xab   : > { %v260_v3 = vpop.f32.mrf.mxu1 }
  0xac   : > { %v261_v4 = vadd.f32 %v260_v3, %v237_v2 }
  0xaf   : > { %v302_v5 = vpop.f32.mrf.mxu2 }
  0xb0   : > { %v308_v6 = vadd.f32 %v302_v5, %v261_v4 }
  0xb2   : > { %v310_v7 = vmul.f32 0.01, %v308_v6  ;;  %v240_v8 = vpop.f32.mrf.mxu3 }
  0xb3   : > { %v263_v9 = vpop.f32.mrf.mxu1 }
  0xb4   : > { %v312_v10 = vmax.f32 %v308_v6, %v310_v7  ;;  %v264_v11 = vadd.f32 %v263_v9, %v240_v8 }
  0xb6   : > { %314 = vst [vmem:[%s148_s17] sm:$0xff] %v312_v10 }
  0xb7   : > { %v305_v12 = vpop.f32.mrf.mxu2 }
  0xb8   : > { %v309_v13 = vadd.f32 %v305_v12, %v264_v11 }
  0xba   : > { %v311_v14 = vmul.f32 0.01, %v309_v13 }
  0xbc   : > { %v313_v15 = vmax.f32 %v309_v13, %v311_v14 }
  0xbe   : > { %315 = vst [vmem:[%s148_s17 + $0x8] sm:$0xff] %v313_v15 }
  0xbf PF: > { %s14_s14 = sadd.s32 1, %s456_s14  }
  0xc0   : > { %p11_p4 = scmp.ge.s32.totalorder %s14_s14, 4  }
  0xc2   :  { %13 = sbr.rel (!%p11_p4) target bundleno = 2 (0x2), region = 64 }

</bundles_post_ra>
